<compile_context>
chip_gen: v5e
topology: v5e:2x2
jax: 0.10.0
libtpu: 0.0.40
codegen_flags: <defaults>
</compile_context>

<pallas_src>
import jax
import jax.numpy as jnp
from jax import lax
from jax.experimental import pallas as pl
from jax.experimental.pallas import tpu as pltpu


def _make_warp_kernel(C, H, W, HW, T):
    inv_w = 1.0 / max(W - 1, 1)
    inv_h = 1.0 / max(H - 1, 1)
    half_w = 0.5 * (W - 1)
    half_h = 0.5 * (H - 1)

    def kernel(grid_ref, x_ref, flo_ref, out_ref, mask_ref):
        # grid_ref: (2, T)   x_ref: (1, C, HW)   flo_ref: (1, 2, T)
        # out_ref: (1, C, T) mask_ref: (1, 1, T)
        xx = grid_ref[0:1, :]                       # (1, T) base x pixel coords
        yy = grid_ref[1:2, :]                       # (1, T) base y pixel coords
        fx = flo_ref[0, 0:1, :]
        fy = flo_ref[0, 1:2, :]

        vx = xx + fx
        vy = yy + fy

        # normalize exactly as the PyTorch module does
        gx = 2.0 * vx * inv_w - 1.0
        gy = 2.0 * vy * inv_h - 1.0

        # grid_sample(align_corners=True) un-normalization
        ix = (gx + 1.0) * half_w
        iy = (gy + 1.0) * half_h

        ix0 = jnp.floor(ix)
        iy0 = jnp.floor(iy)
        ix1 = ix0 + 1.0
        iy1 = iy0 + 1.0
        wx1 = ix - ix0
        wx0 = 1.0 - wx1
        wy1 = iy - iy0
        wy0 = 1.0 - wy1

        # per-corner validity (zeros padding for OOB corners) -- all (1, T)
        x_ok0 = (ix0 >= 0.0) & (ix0 <= W - 1.0)
        x_ok1 = (ix1 >= 0.0) & (ix1 <= W - 1.0)
        y_ok0 = (iy0 >= 0.0) & (iy0 <= H - 1.0)
        y_ok1 = (iy1 >= 0.0) & (iy1 <= H - 1.0)

        zero = jnp.zeros_like(wx0)
        w00 = jnp.where(x_ok0 & y_ok0, wx0 * wy0, zero)
        w10 = jnp.where(x_ok1 & y_ok0, wx1 * wy0, zero)
        w01 = jnp.where(x_ok0 & y_ok1, wx0 * wy1, zero)
        w11 = jnp.where(x_ok1 & y_ok1, wx1 * wy1, zero)

        # Combined one-hot weight slab.  Corner flat indices are idx00 + {0,1,W,W+1};
        # a single difference d = q - idx00 selects all four corners (the constants are
        # mutually exclusive for W >= 2).  Invalid-corner aliasing is harmless because
        # the corresponding weight was zeroed above.
        idx00 = (iy0 * W + ix0).astype(jnp.int32)                  # (1, T)
        q = lax.broadcasted_iota(jnp.int32, (HW, T), 0)            # source flat index
        d = q - idx00                                              # (HW, T)

        m = jnp.where(d == 0, w00,
            jnp.where(d == 1, w10,
            jnp.where(d == W, w01,
            jnp.where(d == W + 1, w11, 0.0))))                     # (HW, T) f32

        # Single MXU pass: (C, HW) @ (HW, T) -> (C, T)
        out = jnp.dot(x_ref[0], m, preferred_element_type=jnp.float32)

        mask_f = ((jnp.abs(gx) < 1.0) & (jnp.abs(gy) < 1.0)).astype(jnp.float32)

        out_ref[0] = (out * mask_f).astype(out_ref.dtype)
        mask_ref[0] = mask_f

    return kernel


def warp_pallas(x, flo, *, lane_tile=None):
    """x: (B, C, H, W) float32, flo: (B, 2, H, W) float32 -> (warped, mask_bool)."""
    B, C, H, W = x.shape
    assert flo.shape == (B, 2, H, W)
    HW = H * W

    # Pick the output-pixel lane tile (multiple of 128, dividing HW; else full HW).
    if lane_tile is None:
        lane_tile = next((t for t in (512, 256, 128) if HW % t == 0), HW)
    if HW % lane_tile != 0 or (lane_tile != HW and lane_tile % 128 != 0):
        lane_tile = HW
    num_tiles = HW // lane_tile

    x_flat = x.reshape(B, C, HW)
    flo_flat = flo.reshape(B, 2, HW)

    # Precomputed base pixel grid (trace-time constant), hoists % and // out of kernel.
    xs = jnp.arange(W, dtype=jnp.float32)
    ys = jnp.arange(H, dtype=jnp.float32)
    xx = jnp.broadcast_to(xs[None, :], (H, W)).reshape(HW)
    yy = jnp.broadcast_to(ys[:, None], (H, W)).reshape(HW)
    base_grid = jnp.stack([xx, yy], axis=0)                        # (2, HW)

    # Explicit VMEM budget: weight slab (f32) + int iota/diff + double-buffered blocks.
    slab_bytes = HW * lane_tile * 8
    io_bytes = 4 * (C * HW + (2 + 2 + C + 1) * lane_tile) * 2
    vmem_limit = int(min(max(4 * (slab_bytes + io_bytes), 16 * 2**20), 48 * 2**20))

    kernel = _make_warp_kernel(C, H, W, HW, lane_tile)
    out_flat, mask_flat = pl.pallas_call(
        kernel,
        out_shape=(jax.ShapeDtypeStruct((B, C, HW), x.dtype),
                   jax.ShapeDtypeStruct((B, 1, HW), jnp.float32)),
        grid=(B, num_tiles),
        in_specs=[
            pl.BlockSpec((2, lane_tile), lambda b, t: (0, t)),      # base grid
            pl.BlockSpec((1, C, HW), lambda b, t: (b, 0, 0)),       # x, resident over t
            pl.BlockSpec((1, 2, lane_tile), lambda b, t: (b, 0, t)),
        ],
        out_specs=(
            pl.BlockSpec((1, C, lane_tile), lambda b, t: (b, 0, t)),
            pl.BlockSpec((1, 1, lane_tile), lambda b, t: (b, 0, t)),
        ),
        compiler_params=pltpu.CompilerParams(
            dimension_semantics=("parallel", "parallel"),
            vmem_limit_bytes=vmem_limit),
    )(base_grid, x_flat, flo_flat)

    warped = out_flat.reshape(B, C, H, W)
    mask = mask_flat.reshape(B, H, W) > 0
    return warped, mask


def warp_reference(x, flo):
    """Pure-JAX reference of the PyTorch forward (for verification)."""
    B, C, H, W = x.shape
    xx = jnp.broadcast_to(jnp.arange(W, dtype=jnp.float32)[None, :], (H, W))
    yy = jnp.broadcast_to(jnp.arange(H, dtype=jnp.float32)[:, None], (H, W))
    vx = xx[None] + flo[:, 0]
    vy = yy[None] + flo[:, 1]
    gx = 2.0 * vx / max(W - 1, 1) - 1.0
    gy = 2.0 * vy / max(H - 1, 1) - 1.0
    ix = (gx + 1.0) * 0.5 * (W - 1)
    iy = (gy + 1.0) * 0.5 * (H - 1)
    ix0 = jnp.floor(ix)
    iy0 = jnp.floor(iy)
    ix1 = ix0 + 1.0
    iy1 = iy0 + 1.0
    wx1 = ix - ix0
    wx0 = 1.0 - wx1
    wy1 = iy - iy0
    wy0 = 1.0 - wy1

    xf = x.reshape(B, C, H * W)

    def sample(cx, cy, w):
        valid = (cx >= 0) & (cx <= W - 1) & (cy >= 0) & (cy <= H - 1)
        cxi = jnp.clip(cx.astype(jnp.int32), 0, W - 1)
        cyi = jnp.clip(cy.astype(jnp.int32), 0, H - 1)
        idx = (cyi * W + cxi).reshape(B, 1, H * W)
        idx = jnp.broadcast_to(idx, (B, C, H * W))
        vals = jnp.take_along_axis(xf, idx, axis=2).reshape(B, C, H, W)
        return vals * (w * valid.astype(jnp.float32))[:, None]

    out = (sample(ix0, iy0, wx0 * wy0) + sample(ix1, iy0, wx1 * wy0)
           + sample(ix0, iy1, wx0 * wy1) + sample(ix1, iy1, wx1 * wy1))
    mask = (jnp.abs(gx) < 1.0) & (jnp.abs(gy) < 1.0)
    return out * mask[:, None].astype(jnp.float32), mask


if __name__ == "__main__":
    B, C, H, W = 2, 4, 16, 16
    key = jax.random.PRNGKey(0)
    kx, kf = jax.random.split(key)
    x = jax.random.normal(kx, (B, C, H, W), dtype=jnp.float32)
    # flows of a few pixels, some pushing coordinates out of bounds
    flo = 3.0 * jax.random.normal(kf, (B, 2, H, W), dtype=jnp.float32)

    # lane_tile=128 exercises the multi-tile grid path (grid = (B, 2)).
    warped, mask = jax.block_until_ready(warp_pallas(x, flo, lane_tile=128))
    warped_ref, mask_ref = warp_reference(x, flo)

    assert warped.shape == (B, C, H, W) and mask.shape == (B, H, W)
    assert bool(jnp.all(mask == mask_ref))
    assert bool(jnp.allclose(warped, warped_ref, rtol=1e-5, atol=1e-5))
    print("KERNEL_OK")
</pallas_src>

<mosaic_0001>
module attributes {stable_mosaic.version = 11 : i64} {
  func.func @kernel(%arg0: i32, %arg1: i32, %arg2: memref<2x128xf32, #tpu.memory_space<vmem>>, %arg3: memref<1x4x256xf32, #tpu.memory_space<vmem>>, %arg4: memref<1x2x128xf32, #tpu.memory_space<vmem>>, %arg5: memref<1x4x128xf32, #tpu.memory_space<vmem>>, %arg6: memref<1x1x128xf32, #tpu.memory_space<vmem>>) attributes {dimension_semantics = [#tpu.dimension_semantics<parallel>, #tpu.dimension_semantics<parallel>], iteration_bounds = array<i64: 2, 2>, scalar_prefetch = 0 : i64, scratch_operands = 0 : i64, tpu.core_type = #tpu.core_type<tc>, window_params = [{transform_indices = @transform_0, window_bounds = array<i64: 2, 128>}, {transform_indices = @transform_1, window_bounds = array<i64: 1, 4, 256>}, {transform_indices = @transform_2, window_bounds = array<i64: 1, 2, 128>}, {transform_indices = @transform_3, window_bounds = array<i64: 1, 4, 128>}, {transform_indices = @transform_4, window_bounds = array<i64: 1, 1, 128>}]} {
    %c0 = arith.constant 0 : index
    %c0_0 = arith.constant 0 : index
    %0 = vector.load %arg2[%c0, %c0_0] : memref<2x128xf32, #tpu.memory_space<vmem>>, vector<1x128xf32>
    %c1 = arith.constant 1 : index
    %c0_1 = arith.constant 0 : index
    %1 = vector.load %arg2[%c1, %c0_1] : memref<2x128xf32, #tpu.memory_space<vmem>>, vector<1x128xf32>
    %c0_2 = arith.constant 0 : index
    %c0_3 = arith.constant 0 : index
    %c0_4 = arith.constant 0 : index
    %2 = vector.load %arg4[%c0_2, %c0_3, %c0_4] : memref<1x2x128xf32, #tpu.memory_space<vmem>>, vector<1x1x128xf32>
    %3 = vector.shape_cast %2 : vector<1x1x128xf32> to vector<1x128xf32>
    %c0_5 = arith.constant 0 : index
    %c1_6 = arith.constant 1 : index
    %c0_7 = arith.constant 0 : index
    %4 = vector.load %arg4[%c0_5, %c1_6, %c0_7] : memref<1x2x128xf32, #tpu.memory_space<vmem>>, vector<1x1x128xf32>
    %5 = vector.shape_cast %4 : vector<1x1x128xf32> to vector<1x128xf32>
    %6 = arith.addf %0, %3 : vector<1x128xf32>
    %7 = arith.addf %1, %5 : vector<1x128xf32>
    %cst = arith.constant 2.000000e+00 : f32
    %8 = vector.broadcast %cst : f32 to vector<1x128xf32>
    %9 = arith.mulf %8, %6 : vector<1x128xf32>
    %cst_8 = arith.constant 0.0666666701 : f32
    %10 = vector.broadcast %cst_8 : f32 to vector<1x128xf32>
    %11 = arith.mulf %9, %10 : vector<1x128xf32>
    %cst_9 = arith.constant 1.000000e+00 : f32
    %12 = vector.broadcast %cst_9 : f32 to vector<1x128xf32>
    %13 = arith.subf %11, %12 : vector<1x128xf32>
    %cst_10 = arith.constant 2.000000e+00 : f32
    %14 = vector.broadcast %cst_10 : f32 to vector<1x128xf32>
    %15 = arith.mulf %14, %7 : vector<1x128xf32>
    %cst_11 = arith.constant 0.0666666701 : f32
    %16 = vector.broadcast %cst_11 : f32 to vector<1x128xf32>
    %17 = arith.mulf %15, %16 : vector<1x128xf32>
    %cst_12 = arith.constant 1.000000e+00 : f32
    %18 = vector.broadcast %cst_12 : f32 to vector<1x128xf32>
    %19 = arith.subf %17, %18 : vector<1x128xf32>
    %cst_13 = arith.constant 1.000000e+00 : f32
    %20 = vector.broadcast %cst_13 : f32 to vector<1x128xf32>
    %21 = arith.addf %13, %20 : vector<1x128xf32>
    %cst_14 = arith.constant 7.500000e+00 : f32
    %22 = vector.broadcast %cst_14 : f32 to vector<1x128xf32>
    %23 = arith.mulf %21, %22 : vector<1x128xf32>
    %cst_15 = arith.constant 1.000000e+00 : f32
    %24 = vector.broadcast %cst_15 : f32 to vector<1x128xf32>
    %25 = arith.addf %19, %24 : vector<1x128xf32>
    %cst_16 = arith.constant 7.500000e+00 : f32
    %26 = vector.broadcast %cst_16 : f32 to vector<1x128xf32>
    %27 = arith.mulf %25, %26 : vector<1x128xf32>
    %28 = math.floor %23 : vector<1x128xf32>
    %29 = math.floor %27 : vector<1x128xf32>
    %cst_17 = arith.constant 1.000000e+00 : f32
    %30 = vector.broadcast %cst_17 : f32 to vector<1x128xf32>
    %31 = arith.addf %28, %30 : vector<1x128xf32>
    %cst_18 = arith.constant 1.000000e+00 : f32
    %32 = vector.broadcast %cst_18 : f32 to vector<1x128xf32>
    %33 = arith.addf %29, %32 : vector<1x128xf32>
    %34 = arith.subf %23, %28 : vector<1x128xf32>
    %cst_19 = arith.constant 1.000000e+00 : f32
    %35 = vector.broadcast %cst_19 : f32 to vector<1x128xf32>
    %36 = arith.subf %35, %34 : vector<1x128xf32>
    %37 = arith.subf %27, %29 : vector<1x128xf32>
    %cst_20 = arith.constant 1.000000e+00 : f32
    %38 = vector.broadcast %cst_20 : f32 to vector<1x128xf32>
    %39 = arith.subf %38, %37 : vector<1x128xf32>
    %cst_21 = arith.constant 0.000000e+00 : f32
    %40 = vector.broadcast %cst_21 : f32 to vector<1x128xf32>
    %41 = arith.cmpf oge, %28, %40 : vector<1x128xf32>
    %cst_22 = arith.constant 1.500000e+01 : f32
    %42 = vector.broadcast %cst_22 : f32 to vector<1x128xf32>
    %43 = arith.cmpf ole, %28, %42 : vector<1x128xf32>
    %44 = arith.andi %41, %43 : vector<1x128xi1>
    %cst_23 = arith.constant 0.000000e+00 : f32
    %45 = vector.broadcast %cst_23 : f32 to vector<1x128xf32>
    %46 = arith.cmpf oge, %31, %45 : vector<1x128xf32>
    %cst_24 = arith.constant 1.500000e+01 : f32
    %47 = vector.broadcast %cst_24 : f32 to vector<1x128xf32>
    %48 = arith.cmpf ole, %31, %47 : vector<1x128xf32>
    %49 = arith.andi %46, %48 : vector<1x128xi1>
    %cst_25 = arith.constant 0.000000e+00 : f32
    %50 = vector.broadcast %cst_25 : f32 to vector<1x128xf32>
    %51 = arith.cmpf oge, %29, %50 : vector<1x128xf32>
    %cst_26 = arith.constant 1.500000e+01 : f32
    %52 = vector.broadcast %cst_26 : f32 to vector<1x128xf32>
    %53 = arith.cmpf ole, %29, %52 : vector<1x128xf32>
    %54 = arith.andi %51, %53 : vector<1x128xi1>
    %cst_27 = arith.constant 0.000000e+00 : f32
    %55 = vector.broadcast %cst_27 : f32 to vector<1x128xf32>
    %56 = arith.cmpf oge, %33, %55 : vector<1x128xf32>
    %cst_28 = arith.constant 1.500000e+01 : f32
    %57 = vector.broadcast %cst_28 : f32 to vector<1x128xf32>
    %58 = arith.cmpf ole, %33, %57 : vector<1x128xf32>
    %59 = arith.andi %56, %58 : vector<1x128xi1>
    %cst_29 = arith.constant 0.000000e+00 : f32
    %60 = vector.broadcast %cst_29 : f32 to vector<1x128xf32>
    %61 = arith.andi %44, %54 : vector<1x128xi1>
    %62 = arith.mulf %36, %39 : vector<1x128xf32>
    %63 = arith.select %61, %62, %60 : vector<1x128xi1>, vector<1x128xf32>
    %64 = arith.andi %49, %54 : vector<1x128xi1>
    %65 = arith.mulf %34, %39 : vector<1x128xf32>
    %66 = arith.select %64, %65, %60 : vector<1x128xi1>, vector<1x128xf32>
    %67 = arith.andi %44, %59 : vector<1x128xi1>
    %68 = arith.mulf %36, %37 : vector<1x128xf32>
    %69 = arith.select %67, %68, %60 : vector<1x128xi1>, vector<1x128xf32>
    %70 = arith.andi %49, %59 : vector<1x128xi1>
    %71 = arith.mulf %34, %37 : vector<1x128xf32>
    %72 = arith.select %70, %71, %60 : vector<1x128xi1>, vector<1x128xf32>
    %cst_30 = arith.constant 1.600000e+01 : f32
    %73 = vector.broadcast %cst_30 : f32 to vector<1x128xf32>
    %74 = arith.mulf %29, %73 : vector<1x128xf32>
    %75 = arith.addf %74, %28 : vector<1x128xf32>
    %76 = arith.fptosi %75 : vector<1x128xf32> to vector<1x128xi32>
    %77 = tpu.iota {dimensions = array<i32: 0>} : vector<256x128xi32>
    %78 = vector.broadcast %76 : vector<1x128xi32> to vector<256x128xi32>
    %79 = arith.subi %77, %78 : vector<256x128xi32>
    %c0_i32 = arith.constant 0 : i32
    %80 = vector.broadcast %c0_i32 : i32 to vector<256x128xi32>
    %81 = arith.cmpi eq, %79, %80 : vector<256x128xi32>
    %c1_i32 = arith.constant 1 : i32
    %82 = vector.broadcast %c1_i32 : i32 to vector<256x128xi32>
    %83 = arith.cmpi eq, %79, %82 : vector<256x128xi32>
    %c16_i32 = arith.constant 16 : i32
    %84 = vector.broadcast %c16_i32 : i32 to vector<256x128xi32>
    %85 = arith.cmpi eq, %79, %84 : vector<256x128xi32>
    %c17_i32 = arith.constant 17 : i32
    %86 = vector.broadcast %c17_i32 : i32 to vector<256x128xi32>
    %87 = arith.cmpi eq, %79, %86 : vector<256x128xi32>
    %cst_31 = arith.constant 0.000000e+00 : f32
    %88 = vector.shape_cast %72 : vector<1x128xf32> to vector<1x128xf32>
    %89 = vector.broadcast %88 : vector<1x128xf32> to vector<256x128xf32>
    %90 = vector.broadcast %cst_31 : f32 to vector<256x128xf32>
    %91 = arith.select %87, %89, %90 : vector<256x128xi1>, vector<256x128xf32>
    %92 = vector.shape_cast %69 : vector<1x128xf32> to vector<1x128xf32>
    %93 = vector.broadcast %92 : vector<1x128xf32> to vector<256x128xf32>
    %94 = arith.select %85, %93, %91 : vector<256x128xi1>, vector<256x128xf32>
    %95 = vector.shape_cast %66 : vector<1x128xf32> to vector<1x128xf32>
    %96 = vector.broadcast %95 : vector<1x128xf32> to vector<256x128xf32>
    %97 = arith.select %83, %96, %94 : vector<256x128xi1>, vector<256x128xf32>
    %98 = vector.shape_cast %63 : vector<1x128xf32> to vector<1x128xf32>
    %99 = vector.broadcast %98 : vector<1x128xf32> to vector<256x128xf32>
    %100 = arith.select %81, %99, %97 : vector<256x128xi1>, vector<256x128xf32>
    %c0_32 = arith.constant 0 : index
    %c0_33 = arith.constant 0 : index
    %c0_34 = arith.constant 0 : index
    %101 = vector.load %arg3[%c0_32, %c0_33, %c0_34] : memref<1x4x256xf32, #tpu.memory_space<vmem>>, vector<1x4x256xf32>
    %102 = vector.shape_cast %101 : vector<1x4x256xf32> to vector<4x256xf32>
    %cst_35 = arith.constant dense<0.000000e+00> : vector<4x128xf32>
    %103 = tpu.matmul %102, %100, %cst_35 {dimension_numbers = #tpu.dot_dimension_numbers<[1], [0], [0], [1], [0, 0, 1, 1], [], []>} : vector<4x256xf32>, vector<256x128xf32>, vector<4x128xf32> -> vector<4x128xf32>
    %104 = math.absf %13 : vector<1x128xf32>
    %cst_36 = arith.constant 1.000000e+00 : f32
    %105 = vector.broadcast %cst_36 : f32 to vector<1x128xf32>
    %106 = arith.cmpf olt, %104, %105 : vector<1x128xf32>
    %107 = math.absf %19 : vector<1x128xf32>
    %cst_37 = arith.constant 1.000000e+00 : f32
    %108 = vector.broadcast %cst_37 : f32 to vector<1x128xf32>
    %109 = arith.cmpf olt, %107, %108 : vector<1x128xf32>
    %110 = arith.andi %106, %109 : vector<1x128xi1>
    %111 = arith.extui %110 : vector<1x128xi1> to vector<1x128xi32>
    %112 = arith.sitofp %111 : vector<1x128xi32> to vector<1x128xf32>
    %113 = vector.broadcast %112 : vector<1x128xf32> to vector<4x128xf32>
    %114 = arith.mulf %103, %113 : vector<4x128xf32>
    %c0_38 = arith.constant 0 : index
    %c0_39 = arith.constant 0 : index
    %c0_40 = arith.constant 0 : index
    %115 = vector.load %arg5[%c0_38, %c0_39, %c0_40] : memref<1x4x128xf32, #tpu.memory_space<vmem>>, vector<1x4x128xf32>
    %116 = vector.shape_cast %115 : vector<1x4x128xf32> to vector<4x128xf32>
    %117 = vector.shape_cast %114 : vector<4x128xf32> to vector<1x4x128xf32>
    tpu.vector_store %arg5[%c0_38, %c0_39, %c0_40], %117 {strides = array<i32>} : memref<1x4x128xf32, #tpu.memory_space<vmem>>, vector<1x4x128xf32>,
    %c0_41 = arith.constant 0 : index
    %c0_42 = arith.constant 0 : index
    %c0_43 = arith.constant 0 : index
    %118 = vector.load %arg6[%c0_41, %c0_42, %c0_43] : memref<1x1x128xf32, #tpu.memory_space<vmem>>, vector<1x1x128xf32>
    %119 = vector.shape_cast %118 : vector<1x1x128xf32> to vector<1x128xf32>
    %120 = vector.shape_cast %112 : vector<1x128xf32> to vector<1x1x128xf32>
    tpu.vector_store %arg6[%c0_41, %c0_42, %c0_43], %120 {strides = array<i32>} : memref<1x1x128xf32, #tpu.memory_space<vmem>>, vector<1x1x128xf32>,
    return
  }
  func.func @transform_0(%arg0: i32, %arg1: i32) -> (i32, i32) {
    %c0_i32 = arith.constant 0 : i32
    %c0_i32_0 = arith.constant 0 : i32
    return %c0_i32, %arg1 : i32, i32
  }
  func.func @transform_1(%arg0: i32, %arg1: i32) -> (i32, i32, i32) {
    %c0_i32 = arith.constant 0 : i32
    %c0_i32_0 = arith.constant 0 : i32
    %c0_i32_1 = arith.constant 0 : i32
    return %arg0, %c0_i32, %c0_i32_0 : i32, i32, i32
  }
  func.func @transform_2(%arg0: i32, %arg1: i32) -> (i32, i32, i32) {
    %c0_i32 = arith.constant 0 : i32
    %c0_i32_0 = arith.constant 0 : i32
    return %arg0, %c0_i32, %arg1 : i32, i32, i32
  }
  func.func @transform_3(%arg0: i32, %arg1: i32) -> (i32, i32, i32) {
    %c0_i32 = arith.constant 0 : i32
    %c0_i32_0 = arith.constant 0 : i32
    return %arg0, %c0_i32, %arg1 : i32, i32, i32
  }
  func.func @transform_4(%arg0: i32, %arg1: i32) -> (i32, i32, i32) {
    %c0_i32 = arith.constant 0 : i32
    %c0_i32_0 = arith.constant 0 : i32
    return %arg0, %c0_i32, %arg1 : i32, i32, i32
  }
}

</mosaic_0001>

<bundles_post_ra>
// kernel: tpu_custom_call.1
= control target key start
LH: loop header
LB: loop body
LE: loop exit
PB: predicated region body
PF: predicated region fallthrough
CT: control target
= control target key end

     0   :  { %s2068_s0 = inlined_call_operand.hbm [shape: f32[2,256], index: 0, kind: input, shape index: {}]   ;;  %s2069_s1 = inlined_call_operand.hbm [shape: f32[2,4,256], index: 1, kind: input, shape index: {}]   ;;  %s2070_s2 = inlined_call_operand.hbm [shape: f32[2,2,256], index: 2, kind: input, shape index: {}]   ;;  %s2071_s3 = inlined_call_operand.hbm [shape: f32[2,4,256], index: 3, kind: output, shape index: {0}]   ;;  %s2072_s4 = inlined_call_operand.hbm [shape: f32[2,1,256], index: 4, kind: output, shape index: {1}]  }
   0x1   :  { %2079 = sst [smem:[#allocation23_spill]] %s2068_s0 }
   0x2   :  { %2080 = sst [smem:[#allocation24_spill]] %s2069_s1 }
   0x3   :  { %2081 = sst [smem:[#allocation25_spill]] %s2071_s3 }
   0x4   :  { %2082 = sst [smem:[#allocation26_spill]] %s2072_s4 }
   0x5   :  { %10 = vsyncpa [#allocation3], 0 }
   0x6   :  { %12 = vsyncpa [#allocation3 + $0x1], 0 }
   0x7   :  { %13 = vsyncpa [#allocation6], 0 }
   0x8   :  { %15 = vsyncpa [#allocation6 + $0x1], 0 }
   0x9   :  { %16 = vsyncpa [#allocation4], 0 }
   0xa   :  { %18 = vsyncpa [#allocation4 + $0x1], 0 }
   0xb   :  { %19 = vsyncpa [#allocation10], 0 }
   0xc   :  { %21 = vsyncpa [#allocation10 + $0x1], 0  ;;  %s1429_s15 = smov 0   ;;  %s1431_s16 = smov 0  }
   0xd   :  { %s1433_s17 = smov 0   ;;  %s1435_s18 = smov 0  }
   0xe   :  { %s1437_s19 = smov 0   ;;  %s1439_s20 = smov 0  }
   0xf   :  { %s1441_s21 = smov 0   ;;  %s1443_s22 = smov 0  }
  0x10   :  { %s1445_s23 = smov 0   ;;  %s1447_s24 = smov 0  }
  0x11   :  { %s1449_s25 = smov 0   ;;  %s1451_s26 = smov 0  }
  0x12   :  { %s1453_s27 = smov 0   ;;  %s1455_s28 = smov 0  }
  0x13 LB: > { %2083 = sst [smem:[#allocation16_spill]] %s1369_s20  ;;  %s1498_s29 = sadd.s32 4294967295, %s1401_s28   ;;  %s1401_s28 = sphi %s1455_s28, %s27_s28   ;;  %s1397_s27 = sphi %s1453_s27, %s2135_s27   ;;  %s1393_s26 = sphi %s1451_s26, %s2134_s26   ;;  %s1389_s25 = sphi %s1449_s25, %s2133_s25   ;;  %s1385_s24 = sphi %s1447_s24, %s2132_s24   ;;  %s1381_s23 = sphi %s1445_s23, %s2131_s23   ;;  %s1377_s22 = sphi %s1443_s22, %s2130_s22   ;;  %s1373_s21 = sphi %s1441_s21, %s2129_s21   ;;  %s1369_s20 = sphi %s1439_s20, %s2119_s20   ;;  %s1365_s19 = sphi %s1437_s19, %s2128_s19   ;;  %s1361_s18 = sphi %s1435_s18, %s2127_s18   ;;  %s1357_s17 = sphi %s1433_s17, %s2126_s17   ;;  %s1353_s16 = sphi %s1431_s16, %s2125_s16   ;;  %s1349_s15 = sphi %s1429_s15, %s2124_s15  }
  0x14   : > { %2084 = sst [smem:[#allocation17_spill]] %s1381_s23  ;;  %p54_p0 = scmp.eq.s32.totalorder %s1401_s28, 0 }
  0x15   : > { %p60_p1 = scmp.eq.s32.totalorder %s1498_s29, 0  ;;  %p79_p2 = scmp.ne.s32.totalorder %s1369_s20, %s1365_s19 }
  0x16   : > { %p85_p3 = scmp.ne.s32.totalorder %s1365_s19, %s1361_s18  ;;  %p1010_p5 = scmp.lt.s32.totalorder %s1401_s28, 4 }
  0x17   : > { %p1509_p4 = por %p79_p2, %p54_p0  ;;  %s212_s8 = sand.u32 1, %s1401_s28  }
  0x18   : > { %p1516_p6 = por %p85_p3, %p60_p1  ;;  %s214_s9 = sand.u32 1, %s1369_s20  }
  0x19   : > { %s957_s10 = sshll.u32 %s214_s9, 3  ;;  %s977_s11 = sshll.u32 %s1397_s27, 3 }
  0x1a   : > { %s2087_s1 = sld [smem:[#allocation24_spill]]  ;;  %s216_s5 = scalar_lea.vmem [#allocation5], %s957_s10 }
  0x1b   : > { %s225_s30 = sshll.u32 %s216_s5, 4  ;;  %p997_p7 = pnand %p1010_p5, %p1509_p4  ;;  %s226_s30 = int_to_ptr.vmem [resolvable:$true] %s225_s30 }
  0x1c   : > { %p963_p8 = scmp.ge.s32.totalorder %s1401_s28, 1  ;;  %p251_p9 = scmp.lt.s32.totalorder %s1401_s28, 5 }
  0x1d   : > { %s1532_s9 = scalar_lea.sflag [#allocation6], %s212_s8  ;;  %s36_s5 = sadd.s32 1, %s1393_s26 }
  0x1e   : > { %p1535_p10 = pnand %p963_p8, %p251_p9  ;;  %p37_p11 = scmp.ge.s32.totalorder %s36_s5, 2 }
  0x1f   : > { %p53_p12 = scmp.ne.s32.totalorder %s1381_s23, %s1377_s22  ;;  %p59_p13 = scmp.ne.s32.totalorder %s1377_s22, %s1373_s21 }
  0x20   : > { %s221_s14 = scalar_lea.hbm %s2087_s1, %s977_s11  ;;  %s46_s11 = sadd.s32 1, %s1381_s23 }
  0x21   : > { %s223_s18 = sshll.u32 %s221_s14, 4  ;;  %s2137_s5 = smov (%p37_p11, %s36_s5), 0  ;;  %s224_s18 = int_to_ptr.hbm [resolvable:$true] %s223_s18 }
  0x22   : > { %999 = dma.hbm_to_vmem [thread:$0]  (!%p997_p7), %s224_s18, 128, %s226_s30, %s1532_s9  }
  0x23   : > { %2089 = sst [smem:[#allocation18_spill]] %s2137_s5  ;;  %s2090_s6 = sadd.s32 1, %s1397_s27 }
  0x24   : > { %s2139_s6 = smov (!%p37_p11, %s2090_s6), %s1397_s27  ;;  %s43_s30 = ssub.s32 %s1393_s26, %s2137_s5 }
  0x25   : > { %p1554_p2 = por %p54_p0, %p53_p12  ;;  %p41_p3 = scmp.ge.s32.totalorder %s2139_s6, 2 }
  0x26   : > { %p44_p4 = scmp.eq.s32.totalorder %s43_s30, 0  ;;  %p1560_p7 = por %p60_p1, %p59_p13 }
  0x27   : > { %s193_s21 = sand.u32 1, %s1381_s23   ;;  %s2141_s6 = smov (%p41_p3, %s2139_s6), 0 }
  0x28   : > { %2093 = sst [smem:[#allocation19_spill]] %s2141_s6  ;;  %s69_s14 = ssub.s32 %s1397_s27, %s2141_s6 }
  0x29   : > { %s1568_s13 = scalar_select %p44_p4, %s1381_s23, %s46_s11  }
  0x2a   : > { %p70_p8 = scmp.eq.s32.totalorder %s69_s14, 0  ;;  %s97_s18 = sor.u32 %s69_s14, %s43_s30 }
  0x2b   : > { %2094 = sst [smem:[#allocation20_spill]] %s1568_s13  ;;  %p1572_p9 = scmp.eq.s32.totalorder %s97_s18, 0 }
  0x2c   : > { %s955_s5 = sshll.u32 %s193_s21, 1  ;;  %s2096_s3 = sadd.s32 1, %s1369_s20 }
  0x2d   : > { %s1579_s4 = scalar_select %p70_p8, %s1369_s20, %s2096_s3  }
  0x2e   : > { %s956_s11 = sshll.u32 %s1393_s26, 1  ;;  %s2098_s0 = sld [smem:[#allocation23_spill]] }
  0x2f   : > { %2097 = sst [smem:[#allocation21_spill]] %s1579_s4  ;;  %s197_s14 = scalar_lea.vmem [#allocation2], %s955_s5 }
  0x30   : > { %s205_s18 = sshll.u32 %s197_s14, 4  ;;  %p994_p11 = pnand %p1010_p5, %p1554_p2  ;;  %s206_s18 = int_to_ptr.vmem [resolvable:$true] %s205_s18 }
  0x31   : > { %s194_s3 = scalar_lea.sflag [#allocation3], %s193_s21  ;;  %s952_s4 = sadd.s32 4294967294, %s1401_s28  }
  0x32   : > { %s100_s20 = sadd.s32 1, %s1357_s17  ;;  %p107_p12 = scmp.ne.s32.totalorder %s1357_s17, %s1353_s16 }
  0x33   : > { %s1596_s6 = scalar_select %p1572_p9, %s1357_s17, %s100_s20  }
  0x34   : > { %s201_s30 = scalar_lea.hbm %s2098_s0, %s956_s11  ;;  %p1600_p13 = por %p107_p12, %p54_p0 }
  0x35   : > { %s203_s23 = sshll.u32 %s201_s30, 4  ;;  %2099 = sst [smem:[#allocation22_spill]] %s1596_s6  ;;  %s204_s23 = int_to_ptr.hbm [resolvable:$true] %s203_s23 }
  0x36   : > { %996 = dma.hbm_to_vmem [thread:$0]  (!%p994_p11), %s204_s23, 32, %s206_s18, %s194_s3  }
  0x37   : > { %p113_p3 = scmp.ne.s32.totalorder %s1353_s16, %s1349_s15  ;;  %p139_p4 = scmp.eq.s32.totalorder %s1498_s29, 3 }
  0x38   : > { %p145_p2 = scmp.eq.s32.totalorder %s952_s4, 3  ;;  %s234_s8 = sand.u32 1, %s1357_s17  }
  0x39   : > { %p1609_p8 = por %p113_p3, %p60_p1  ;;  %p1614_p11 = por %p139_p4, %p107_p12 }
  0x3a   : > { %p1618_p0 = por %p145_p2, %p113_p3  ;;  %s960_s21 = sshll.u32 %s234_s8, 1 }
  0x3b   : > { %s961_s13 = sshll.u32 %s1397_s27, 1  ;;  %s236_s4 = scalar_lea.vmem [#allocation7], %s960_s21 }
  0x3c   : > { %s240_s11 = sadd.s32 %s1393_s26, %s961_s13  ;;  %s246_s14 = sshll.u32 %s236_s4, 4  ;;  %s247_s14 = int_to_ptr.vmem [resolvable:$true] %s246_s14 }
  0x3d   : > { %s962_s30 = sshll.u32 %s240_s11, 1  ;;  %p1000_p1 = pnand %p1010_p5, %p1600_p13 }
  0x3e   : > { %s242_s0 = scalar_lea.hbm %s2070_s2, %s962_s30  ;;  %255 = sbr.rel (%p1535_p10) target bundleno = 318 (0x13e), region = 32 }
  0x3f   : > { %s244_s6 = sshll.u32 %s242_s0, 4  ;;  %s257_s8 = sand.u32 (!%p1535_p10), 1, %s1377_s22   ;;  %s245_s6 = int_to_ptr.hbm [resolvable:$true] %s244_s6 }
  0x40   : > { %1002 = dma.hbm_to_vmem [thread:$0]  (!%p1000_p1), %s245_s6, 32, %s247_s14, %s1532_s9  }
  0x41   : > { %s964_s13 = sshll.u32 (!%p1535_p10), %s257_s8, 1  ;;  %s258_s21 = scalar_lea.sflag (!%p1535_p10), [#allocation3], %s257_s8 }
  0x42   : > { %s261_s11 = scalar_lea.vmem (!%p1535_p10), [#allocation2], %s964_s13 }
  0x43   : > { %1328 = dma.done.wait (%p1560_p7), %s258_s21, 32  }
  0x44   : > { %1330 = vsyncadd (%p1560_p7), %s258_s21, 4294967264  ;;  %s267_s0 = sand.u32 1, %s1498_s29   ;;  %s269_s5 = sand.u32 1, %s1365_s19  }
  0x45   : > { %s1641_s9 = sshll.u32 %s269_s5, 3  ;;  %s268_s10 = scalar_lea.sflag [#allocation6], %s267_s0 }
  0x46   : > { %s271_s6 = scalar_lea.vmem [#allocation5], %s1641_s9 }
  0x47   : > { %1332 = dma.done.wait (%p1516_p6), %s268_s10, 128  }
  0x48   : > { %1334 = vsyncadd (%p1516_p6), %s268_s10, 4294967168  ;;  %s1649_s30 = sand.u32 1, %s1353_s16  }
  0x49   : > { %s966_s12 = sshll.u32 %s1649_s30, 1 }
  0x4a   : > { %s281_s4 = scalar_lea.vmem [#allocation7], %s966_s12 }
  0x4b   : > { %1336 = dma.done.wait (%p1609_p8), %s268_s10, 32  }
  0x4c   : > { %1338 = vsyncadd (%p1609_p8), %s268_s10, 4294967264  ;;  %v321_v0 = vld [vmem:[%s261_s11] sm:$0x1]  ;;  %v322_v1 = vld [vmem:[%s261_s11 + $0x1] sm:$0x1]  ;;  %v372_v14 = vlaneseq  ;;  %s972_s29 = sshll.u32 %s1389_s25, 1 }
  0x4d   : > { %v323_v2 = vld [vmem:[%s281_s4] sm:$0x1]  ;;  %v324_v3 = vld [vmem:[%s281_s4 + $0x1] sm:$0x1]  ;;  %s1980_s7 = sadd.s32 %s1385_s24, %s972_s29  ;;  %s2112_s18 = sld [smem:[#allocation26_spill]] }
  0x4e   : > { %v325_v4 = vadd.f32 %v323_v2, %v321_v0  ;;  %v326_v5 = vadd.f32 %v324_v3, %v322_v1  ;;  %v1662_v19 = vshrl.u32 %v372_v14, 7  ;;  %s320_s13 = scalar_lea.vmem [#allocation9], %s1649_s30  ;;  %s762_s24 = scalar_lea.sflag [#allocation10], %s1649_s30 }
  0x4f   : > { %s790_s21 = sshll.u32 %s320_s13, 4  ;;  %s791_s21 = int_to_ptr.vmem [resolvable:$true] %s790_s21 }
  0x50   : > { %v327_v6 = vmul.f32 2.0, %v325_v4  ;;  %v330_v7 = vmul.f32 2.0, %v326_v5  ;;  %v388_v32 = vadd.s32 120, %v1662_v19  ;;  %v404_v33 = vadd.s32 248, %v1662_v19 }
  0x51   : > { %v387_v40 = vadd.s32 112, %v1662_v19  ;;  %v403_v41 = vadd.s32 240, %v1662_v19  ;;  %v386_v42 = vadd.s32 104, %v1662_v19  ;;  %v402_v43 = vadd.s32 232, %v1662_v19 }
  0x52   : > { %v328_v8 = vmul.f32 0.06666667, %v327_v6  ;;  %v331_v9 = vmul.f32 0.06666667, %v330_v7  ;;  %v385_v44 = vadd.s32 96, %v1662_v19  ;;  %v401_v48 = vadd.s32 224, %v1662_v19 }
  0x53   : > { %v1705_v52 = vadd.s32 88, %v1662_v19  ;;  %v1708_v53 = vadd.s32 216, %v1662_v19  ;;  %v1711_v54 = vadd.s32 80, %v1662_v19  ;;  %v1714_v55 = vadd.s32 208, %v1662_v19  ;;  %s2113_s3 = smov %s2112_s18  ;;  %s788_s8 = scalar_lea.hbm %s2112_s18, %s1980_s7 }
  0x54   : > { %v1656_v10 = vadd.f32 -1.0, %v328_v8  ;;  %v1658_v11 = vadd.f32 -1.0, %v331_v9  ;;  %v1717_v56 = vadd.s32 72, %v1662_v19  ;;  %v1726_v60 = vadd.s32 200, %v1662_v19  ;;  %s792_s11 = sshll.u32 %s788_s8, 4  ;;  %s1235_s10 = scalar_lea.hbm %s2113_s3, 4  ;;  %s793_s11 = int_to_ptr.hbm [resolvable:$true] %s792_s11 }
  0x55   : > { %v1733_v63 = vadd.s32 64, %v1662_v19  ;;  %v1736_v0 = vadd.s32 192, %v1662_v19  ;;  %s1229_s25 = sshra.s32 %s793_s11, 4  ;;  %s1230_s25 = int_to_ptr.hbm [resolvable:$true] %s1229_s25 }
  0x56   : > { %v333_v12 = vadd.f32 1.0, %v1656_v10  ;;  %v335_v13 = vadd.f32 1.0, %v1658_v11  ;;  %s1231_s0 = scalar_lea.hbm %s1230_s25, 1  ;;  %p1236_p7 = scmp.lt.s32.totalorder %s1230_s25, %s2113_s3 }
  0x57   : > { %p1232_p5 = scmp.ne.s32.totalorder %s1230_s25, %s1231_s0  ;;  %p1237_p9 = scmp.lt.s32.totalorder %s1235_s10, %s1231_s0 }
  0x58   : > { %v334_v15 = vmul.f32 7.5, %v333_v12  ;;  %v336_v16 = vmul.f32 7.5, %v335_v13 }
  0x59   : > { %p1233_p6 = pnand %p1232_p5, %p1614_p11  ;;  %p1238_p12 = por %p1237_p9, %p1236_p7 }
  0x5a   : > { %v337_v17 = vfloor.f32 %v334_v15  ;;  %v338_v18 = vfloor.f32 %v336_v16 }
  0x5b   : > { %p1234_p10 = pneg %p1233_p6 }
  0x5c   : > { %v339_v20 = vadd.f32 1.0, %v337_v17  ;;  %v341_v21 = vsub.f32 %v334_v15, %v337_v17  ;;  %vm345_vm0 = vcmp.ge.f32.partialorder %v337_v17, 0.0  ;;  %vm346_vm1 = vcmp.le.f32.partialorder %v337_v17, 15.0 }
  0x5d   : > { %v340_v22 = vadd.f32 1.0, %v338_v18  ;;  %v343_v23 = vsub.f32 %v336_v16, %v338_v18  ;;  %vm1664_vm2 = vmand %vm345_vm0, %vm346_vm1  ;;  %vm351_vm3 = vcmp.ge.f32.partialorder %v338_v18, 0.0  ;;  %vm352_vm4 = vcmp.le.f32.partialorder %v338_v18, 15.0  ;;  %p1239_p13 = pnand %p1238_p12, %p1234_p10 }
  0x5e   : > { %v342_v25 = vsub.f32 1.0, %v341_v21  ;;  %vm348_vm5 = vcmp.ge.f32.partialorder %v339_v20, 0.0  ;;  %vm349_vm6 = vcmp.le.f32.partialorder %v339_v20, 15.0  ;;  %vm1668_vm7 = vmand %vm351_vm3, %vm352_vm4  ;;  %v369_v27 = vmul.f32 16.0, %v338_v18 }
  0x5f   : > { %v344_v28 = vsub.f32 1.0, %v343_v23  ;;  %vm1672_vm8 = vmand %vm348_vm5, %vm349_vm6  ;;  %vm354_vm9 = vcmp.ge.f32.partialorder %v340_v22, 0.0  ;;  %vm355_vm10 = vcmp.le.f32.partialorder %v340_v22, 15.0  ;;  %v367_v37 = vmul.f32 %v343_v23, %v341_v21 }
  0x60   : > { %vm1676_vm11 = vmand %vm354_vm9, %vm355_vm10  ;;  %v370_v31 = vadd.f32 %v369_v27, %v337_v17  ;;  %v364_v36 = vmul.f32 %v343_v23, %v342_v25 }
  0x61   : > { %vm357_vm12 = vmand %vm1664_vm2, %vm1668_vm7  ;;  %v358_v34 = vmul.f32 %v344_v28, %v342_v25  ;;  %v361_v35 = vmul.f32 %v344_v28, %v341_v21 }
  0x62   : > { %vm360_vm13 = vmand %vm1672_vm8, %vm1668_vm7  ;;  %vm978_vm14 = vcmp.lt.s32.totalorder %v370_v31, 0  ;;  %v979_v38 = vceil.f32 %v370_v31  ;;  %v980_v39 = vfloor.f32 %v370_v31 }
  0x63   : > { %vm363_vm15 = vmand %vm1664_vm2, %vm1676_vm11  ;;  %v359_v45 = vsel %vm357_vm12, %v358_v34, 0.0  ;;  %v362_v46 = vsel %vm360_vm13, %v361_v35, 0.0 }
  0x64   : > { %vm366_vm0 = vmand %vm1672_vm8, %vm1676_vm11  ;;  %v981_v47 = vsel %vm978_vm14, %v979_v38, %v980_v39  ;;  %v365_v49 = vsel %vm363_vm15, %v364_v36, 0.0  ;;  %v1721_v58 = vperm.slane %v362_v46, 0  ;;  %v1723_v59 = vperm.slane %v359_v45, 0 }
  0x65   : > { %v368_v50 = vsel %vm366_vm0, %v367_v37, 0.0  ;;  %v982_v51 = vcvt.f32.s32 %v981_v47  ;;  %v1730_v62 = vperm.slane %v365_v49, 0 }
  0x66   : > { %v1728_v61 = vperm.slane %v368_v50, 0 }
  0x67   : > { %v1719_v57 = vperm.slane %v982_v51, 0 }
  0x69   : > { %v421_v1 = vsub.s32 %v388_v32, %v1719_v57  ;;  %v437_v2 = vsub.s32 %v404_v33, %v1719_v57  ;;  %v420_v3 = vsub.s32 %v387_v40, %v1719_v57  ;;  %v436_v4 = vsub.s32 %v403_v41, %v1719_v57 }
  0x6a   : > { %v419_v5 = vsub.s32 %v386_v42, %v1719_v57  ;;  %v435_v6 = vsub.s32 %v402_v43, %v1719_v57  ;;  %v1745_v7 = vsub.s32 %v385_v44, %v1719_v57  ;;  %v1748_v8 = vsub.s32 %v401_v48, %v1719_v57 }
  0x6b   : > { %vm453_vm1 = vcmp.eq.s32.totalorder %v421_v1, 0  ;;  %vm485_vm2 = vcmp.eq.s32.totalorder %v421_v1, 1  ;;  %vm517_vm3 = vcmp.eq.s32.totalorder %v421_v1, 16  ;;  %vm549_vm4 = vcmp.eq.s32.totalorder %v421_v1, 17 }
  0x6c   : > { %v582_v9 = vsel %vm549_vm4, %v1728_v61, 0.0  ;;  %vm469_vm5 = vcmp.eq.s32.totalorder %v437_v2, 0  ;;  %vm501_vm6 = vcmp.eq.s32.totalorder %v437_v2, 1  ;;  %vm533_vm7 = vcmp.eq.s32.totalorder %v437_v2, 16 }
  0x6d   : > { %v615_v12 = vsel %vm517_vm3, %v1730_v62, %v582_v9  ;;  %vm565_vm8 = vcmp.eq.s32.totalorder %v437_v2, 17  ;;  %vm452_vm9 = vcmp.eq.s32.totalorder %v420_v3, 0  ;;  %vm484_vm10 = vcmp.eq.s32.totalorder %v420_v3, 1 }
  0x6e   : > { %v648_v13 = vsel %vm485_vm2, %v1721_v58, %v615_v12  ;;  %v598_v14 = vsel %vm565_vm8, %v1728_v61, 0.0  ;;  %vm516_vm11 = vcmp.eq.s32.totalorder %v420_v3, 16  ;;  %vm548_vm12 = vcmp.eq.s32.totalorder %v420_v3, 17 }
  0x6f   : > { %v681_v15 = vsel %vm453_vm1, %v1723_v59, %v648_v13  ;;  %v631_v16 = vsel %vm533_vm7, %v1730_v62, %v598_v14  ;;  %v581_v17 = vsel %vm548_vm12, %v1728_v61, 0.0  ;;  %vm468_vm13 = vcmp.eq.s32.totalorder %v436_v4, 0 }
  0x70   : > { %705 = vmatpush.msra.mxu0 %v681_v15  ;;  %v664_v18 = vsel %vm501_vm6, %v1721_v58, %v631_v16  ;;  %v614_v20 = vsel %vm516_vm11, %v1730_v62, %v581_v17  ;;  %vm500_vm14 = vcmp.eq.s32.totalorder %v436_v4, 1  ;;  %vm532_vm15 = vcmp.eq.s32.totalorder %v436_v4, 16 }
  0x71   : > { %v697_v21 = vsel %vm469_vm5, %v1723_v59, %v664_v18  ;;  %v647_v22 = vsel %vm484_vm10, %v1721_v58, %v614_v20  ;;  %vm564_vm0 = vcmp.eq.s32.totalorder %v436_v4, 17  ;;  %vm451_vm2 = vcmp.eq.s32.totalorder %v419_v5, 0 }
  0x72   : > { %725 = vmatpush.msra.mxu1 %v697_v21  ;;  %v680_v23 = vsel %vm452_vm9, %v1723_v59, %v647_v22  ;;  %v597_v24 = vsel %vm564_vm0, %v1728_v61, 0.0  ;;  %vm483_vm1 = vcmp.eq.s32.totalorder %v419_v5, 1  ;;  %vm515_vm3 = vcmp.eq.s32.totalorder %v419_v5, 16 }
  0x73   : > { %706 = vmatpush.msra.mxu0 %v680_v23  ;;  %v630_v25 = vsel %vm532_vm15, %v1730_v62, %v597_v24  ;;  %vm547_vm4 = vcmp.eq.s32.totalorder %v419_v5, 17  ;;  %vm467_vm6 = vcmp.eq.s32.totalorder %v435_v6, 0  ;;  %vm499_vm7 = vcmp.eq.s32.totalorder %v435_v6, 1 }
  0x74   : > { %v663_v26 = vsel %vm500_vm14, %v1721_v58, %v630_v25  ;;  %v580_v27 = vsel %vm547_vm4, %v1728_v61, 0.0  ;;  %vm531_vm5 = vcmp.eq.s32.totalorder %v435_v6, 16  ;;  %vm563_vm8 = vcmp.eq.s32.totalorder %v435_v6, 17 }
  0x75   : > { %v696_v28 = vsel %vm468_vm13, %v1723_v59, %v663_v26  ;;  %v613_v29 = vsel %vm515_vm3, %v1730_v62, %v580_v27  ;;  %v596_v30 = vsel %vm563_vm8, %v1728_v61, 0.0  ;;  %vm450_vm9 = vcmp.eq.s32.totalorder %v1745_v7, 0 }
  0x76   : > { %726 = vmatpush.msra.mxu1 %v696_v28  ;;  %v646_v31 = vsel %vm483_vm1, %v1721_v58, %v613_v29  ;;  %v629_v32 = vsel %vm531_vm5, %v1730_v62, %v596_v30  ;;  %vm482_vm10 = vcmp.eq.s32.totalorder %v1745_v7, 1  ;;  %vm514_vm11 = vcmp.eq.s32.totalorder %v1745_v7, 16 }
  0x77   : > { %v679_v33 = vsel %vm451_vm2, %v1723_v59, %v646_v31  ;;  %v662_v34 = vsel %vm499_vm7, %v1721_v58, %v629_v32  ;;  %vm546_vm12 = vcmp.eq.s32.totalorder %v1745_v7, 17  ;;  %vm466_vm13 = vcmp.eq.s32.totalorder %v1748_v8, 0 }
  0x78   : > { %707 = vmatpush.msra.mxu0 %v679_v33  ;;  %v695_v35 = vsel %vm467_vm6, %v1723_v59, %v662_v34  ;;  %v579_v36 = vsel %vm546_vm12, %v1728_v61, 0.0  ;;  %vm498_vm14 = vcmp.eq.s32.totalorder %v1748_v8, 1  ;;  %vm530_vm15 = vcmp.eq.s32.totalorder %v1748_v8, 16 }
  0x79   : > { %727 = vmatpush.msra.mxu1 %v695_v35  ;;  %v612_v37 = vsel %vm514_vm11, %v1730_v62, %v579_v36  ;;  %vm562_vm0 = vcmp.eq.s32.totalorder %v1748_v8, 17  ;;  %v417_v38 = vsub.s32 %v1705_v52, %v1719_v57  ;;  %v433_v39 = vsub.s32 %v1708_v53, %v1719_v57 }
  0x7a   : > { %v645_v40 = vsel %vm482_vm10, %v1721_v58, %v612_v37  ;;  %v595_v41 = vsel %vm562_vm0, %v1728_v61, 0.0  ;;  %v416_v42 = vsub.s32 %v1711_v54, %v1719_v57  ;;  %v432_v43 = vsub.s32 %v1714_v55, %v1719_v57 }
  0x7b   : > { %v678_v44 = vsel %vm450_vm9, %v1723_v59, %v645_v40  ;;  %v628_v45 = vsel %vm530_vm15, %v1730_v62, %v595_v41  ;;  %vm449_vm2 = vcmp.eq.s32.totalorder %v417_v38, 0  ;;  %vm481_vm1 = vcmp.eq.s32.totalorder %v417_v38, 1  ;;  %v698_v40 = vld [vmem:[%s271_s6] sm:$0xff] }
  0x7c   : > { %708 = vmatpush.msra.mxu0 %v678_v44  ;;  %v661_v46 = vsel %vm498_vm14, %v1721_v58, %v628_v45  ;;  %vm513_vm3 = vcmp.eq.s32.totalorder %v417_v38, 16  ;;  %vm545_vm4 = vcmp.eq.s32.totalorder %v417_v38, 17  ;;  %vm465_vm6 = vcmp.eq.s32.totalorder %v433_v39, 0  ;;  %700 = vst [vmem:[#allocation1] ss:$2 sm:$0xff] %v698_v40 }
  0x7d   : > { %v694_v47 = vsel %vm466_vm13, %v1723_v59, %v661_v46  ;;  %v578_v48 = vsel %vm545_vm4, %v1728_v61, 0.0  ;;  %vm497_vm7 = vcmp.eq.s32.totalorder %v433_v39, 1  ;;  %vm529_vm5 = vcmp.eq.s32.totalorder %v433_v39, 16 }
  0x7e   : > { %728 = vmatpush.msra.mxu1 %v694_v47  ;;  %v611_v49 = vsel %vm513_vm3, %v1730_v62, %v578_v48  ;;  %vm561_vm8 = vcmp.eq.s32.totalorder %v433_v39, 17  ;;  %vm448_vm9 = vcmp.eq.s32.totalorder %v416_v42, 0  ;;  %vm480_vm10 = vcmp.eq.s32.totalorder %v416_v42, 1 }
  0x7f   : > { %v644_v50 = vsel %vm481_vm1, %v1721_v58, %v611_v49  ;;  %v594_v51 = vsel %vm561_vm8, %v1728_v61, 0.0  ;;  %vm512_vm11 = vcmp.eq.s32.totalorder %v416_v42, 16  ;;  %vm544_vm12 = vcmp.eq.s32.totalorder %v416_v42, 17 }
  0x80   : > { %v677_v52 = vsel %vm449_vm2, %v1723_v59, %v644_v50  ;;  %v627_v53 = vsel %vm529_vm5, %v1730_v62, %v594_v51  ;;  %v577_v54 = vsel %vm544_vm12, %v1728_v61, 0.0  ;;  %vm464_vm13 = vcmp.eq.s32.totalorder %v432_v43, 0 }
  0x81   : > { %709 = vmatpush.msra.mxu0 %v677_v52  ;;  %v660_v55 = vsel %vm497_vm7, %v1721_v58, %v627_v53  ;;  %v610_v1 = vsel %vm512_vm11, %v1730_v62, %v577_v54  ;;  %vm496_vm14 = vcmp.eq.s32.totalorder %v432_v43, 1  ;;  %vm528_vm15 = vcmp.eq.s32.totalorder %v432_v43, 16 }
  0x82   : > { %v693_v2 = vsel %vm465_vm6, %v1723_v59, %v660_v55  ;;  %v643_v3 = vsel %vm480_vm10, %v1721_v58, %v610_v1  ;;  %vm560_vm0 = vcmp.eq.s32.totalorder %v432_v43, 17  ;;  %v415_v4 = vsub.s32 %v1717_v56, %v1719_v57 }
  0x83   : > { %729 = vmatpush.msra.mxu1 %v693_v2  ;;  %v676_v5 = vsel %vm448_vm9, %v1723_v59, %v643_v3  ;;  %v593_v6 = vsel %vm560_vm0, %v1728_v61, 0.0  ;;  %v431_v7 = vsub.s32 %v1726_v60, %v1719_v57  ;;  %v414_v8 = vsub.s32 %v1733_v63, %v1719_v57 }
  0x84   : > { %710 = vmatpush.msra.mxu0 %v676_v5  ;;  %v626_v9 = vsel %vm528_vm15, %v1730_v62, %v593_v6  ;;  %vm447_vm2 = vcmp.eq.s32.totalorder %v415_v4, 0  ;;  %vm479_vm1 = vcmp.eq.s32.totalorder %v415_v4, 1  ;;  %vm511_vm3 = vcmp.eq.s32.totalorder %v415_v4, 16 }
  0x85   : > { %v659_v56 = vsel %vm496_vm14, %v1721_v58, %v626_v9  ;;  %vm543_vm4 = vcmp.eq.s32.totalorder %v415_v4, 17  ;;  %vm463_vm6 = vcmp.eq.s32.totalorder %v431_v7, 0  ;;  %vm495_vm7 = vcmp.eq.s32.totalorder %v431_v7, 1 }
  0x86   : > { %v692_v12 = vsel %vm464_vm13, %v1723_v59, %v659_v56  ;;  %v576_v60 = vsel %vm543_vm4, %v1728_v61, 0.0  ;;  %vm527_vm5 = vcmp.eq.s32.totalorder %v431_v7, 16  ;;  %vm559_vm8 = vcmp.eq.s32.totalorder %v431_v7, 17 }
  0x87   : > { %730 = vmatpush.msra.mxu1 %v692_v12  ;;  %v609_v63 = vsel %vm511_vm3, %v1730_v62, %v576_v60  ;;  %v592_v13 = vsel %vm559_vm8, %v1728_v61, 0.0  ;;  %vm446_vm9 = vcmp.eq.s32.totalorder %v414_v8, 0  ;;  %vm478_vm10 = vcmp.eq.s32.totalorder %v414_v8, 1 }
  0x88   : > { %v642_v14 = vsel %vm479_vm1, %v1721_v58, %v609_v63  ;;  %v625_v15 = vsel %vm527_vm5, %v1730_v62, %v592_v13  ;;  %vm510_vm11 = vcmp.eq.s32.totalorder %v414_v8, 16  ;;  %vm542_vm12 = vcmp.eq.s32.totalorder %v414_v8, 17 }
  0x89   : > { %v675_v16 = vsel %vm447_vm2, %v1723_v59, %v642_v14  ;;  %v658_v17 = vsel %vm495_vm7, %v1721_v58, %v625_v15  ;;  %v575_v18 = vsel %vm542_vm12, %v1728_v61, 0.0  ;;  %v430_v20 = vsub.s32 %v1736_v0, %v1719_v57 }
  0x8a   : > { %711 = vmatpush.msra.mxu0 %v675_v16  ;;  %v691_v21 = vsel %vm463_vm6, %v1723_v59, %v658_v17  ;;  %v608_v22 = vsel %vm510_vm11, %v1730_v62, %v575_v18  ;;  %v380_v23 = vadd.s32 56, %v1662_v19  ;;  %v396_v24 = vadd.s32 184, %v1662_v19 }
  0x8b   : > { %731 = vmatpush.msra.mxu1 %v691_v21  ;;  %v641_v25 = vsel %vm478_vm10, %v1721_v58, %v608_v22  ;;  %vm462_vm13 = vcmp.eq.s32.totalorder %v430_v20, 0  ;;  %vm494_vm14 = vcmp.eq.s32.totalorder %v430_v20, 1  ;;  %vm526_vm15 = vcmp.eq.s32.totalorder %v430_v20, 16 }
  0x8c   : > { %v674_v26 = vsel %vm446_vm9, %v1723_v59, %v641_v25  ;;  %vm558_vm0 = vcmp.eq.s32.totalorder %v430_v20, 17  ;;  %v413_v0 = vsub.s32 %v380_v23, %v1719_v57  ;;  %v429_v27 = vsub.s32 %v396_v24, %v1719_v57 }
  0x8d   : > { %712 = vmatpush.msra.mxu0 %v674_v26  ;;  %v591_v28 = vsel %vm558_vm0, %v1728_v61, 0.0  ;;  %v379_v29 = vadd.s32 48, %v1662_v19  ;;  %v395_v30 = vadd.s32 176, %v1662_v19  ;;  %v378_v31 = vadd.s32 40, %v1662_v19 }
  0x8e   : > { %v624_v32 = vsel %vm526_vm15, %v1730_v62, %v591_v28  ;;  %vm445_vm2 = vcmp.eq.s32.totalorder %v413_v0, 0  ;;  %vm477_vm1 = vcmp.eq.s32.totalorder %v413_v0, 1  ;;  %vm509_vm3 = vcmp.eq.s32.totalorder %v413_v0, 16 }
  0x8f   : > { %v657_v33 = vsel %vm494_vm14, %v1721_v58, %v624_v32  ;;  %vm541_vm4 = vcmp.eq.s32.totalorder %v413_v0, 17  ;;  %vm461_vm6 = vcmp.eq.s32.totalorder %v429_v27, 0  ;;  %vm493_vm7 = vcmp.eq.s32.totalorder %v429_v27, 1 }
  0x90   : > { %v690_v34 = vsel %vm462_vm13, %v1723_v59, %v657_v33  ;;  %v574_v35 = vsel %vm541_vm4, %v1728_v61, 0.0  ;;  %vm525_vm5 = vcmp.eq.s32.totalorder %v429_v27, 16  ;;  %vm557_vm8 = vcmp.eq.s32.totalorder %v429_v27, 17 }
  0x91   : > { %732 = vmatpush.msra.mxu1 %v690_v34  ;;  %v607_v36 = vsel %vm509_vm3, %v1730_v62, %v574_v35  ;;  %v590_v37 = vsel %vm557_vm8, %v1728_v61, 0.0  ;;  %v412_v38 = vsub.s32 %v379_v29, %v1719_v57  ;;  %v428_v39 = vsub.s32 %v395_v30, %v1719_v57 }
  0x92   : > { %v640_v41 = vsel %vm477_vm1, %v1721_v58, %v607_v36  ;;  %v623_v42 = vsel %vm525_vm5, %v1730_v62, %v590_v37  ;;  %v411_v43 = vsub.s32 %v378_v31, %v1719_v57  ;;  %v394_v44 = vadd.s32 168, %v1662_v19 }
  0x93   : > { %v673_v45 = vsel %vm445_vm2, %v1723_v59, %v640_v41  ;;  %v656_v46 = vsel %vm493_vm7, %v1721_v58, %v623_v42  ;;  %vm444_vm9 = vcmp.eq.s32.totalorder %v412_v38, 0  ;;  %vm476_vm10 = vcmp.eq.s32.totalorder %v412_v38, 1 }
  0x94   : > { %713 = vmatpush.msra.mxu0 %v673_v45  ;;  %v689_v47 = vsel %vm461_vm6, %v1723_v59, %v656_v46  ;;  %vm508_vm11 = vcmp.eq.s32.totalorder %v412_v38, 16  ;;  %vm540_vm12 = vcmp.eq.s32.totalorder %v412_v38, 17  ;;  %vm460_vm13 = vcmp.eq.s32.totalorder %v428_v39, 0 }
  0x95   : > { %733 = vmatpush.msra.mxu1 %v689_v47  ;;  %v573_v48 = vsel %vm540_vm12, %v1728_v61, 0.0  ;;  %vm492_vm14 = vcmp.eq.s32.totalorder %v428_v39, 1  ;;  %vm524_vm15 = vcmp.eq.s32.totalorder %v428_v39, 16  ;;  %vm556_vm0 = vcmp.eq.s32.totalorder %v428_v39, 17 }
  0x96   : > { %v606_v49 = vsel %vm508_vm11, %v1730_v62, %v573_v48  ;;  %v589_v50 = vsel %vm556_vm0, %v1728_v61, 0.0  ;;  %vm443_vm2 = vcmp.eq.s32.totalorder %v411_v43, 0  ;;  %vm475_vm1 = vcmp.eq.s32.totalorder %v411_v43, 1 }
  0x97   : > { %v639_v51 = vsel %vm476_vm10, %v1721_v58, %v606_v49  ;;  %v622_v52 = vsel %vm524_vm15, %v1730_v62, %v589_v50  ;;  %vm507_vm3 = vcmp.eq.s32.totalorder %v411_v43, 16  ;;  %vm539_vm4 = vcmp.eq.s32.totalorder %v411_v43, 17 }
  0x98   : > { %v672_v53 = vsel %vm444_vm9, %v1723_v59, %v639_v51  ;;  %v655_v54 = vsel %vm492_vm14, %v1721_v58, %v622_v52  ;;  %v572_v55 = vsel %vm539_vm4, %v1728_v61, 0.0  ;;  %v427_v1 = vsub.s32 %v394_v44, %v1719_v57 }
  0x99   : > { %714 = vmatpush.msra.mxu0 %v672_v53  ;;  %v688_v2 = vsel %vm460_vm13, %v1723_v59, %v655_v54  ;;  %v605_v3 = vsel %vm507_vm3, %v1730_v62, %v572_v55  ;;  %v377_v4 = vadd.s32 32, %v1662_v19  ;;  %v393_v5 = vadd.s32 160, %v1662_v19 }
  0x9a   : > { %734 = vmatpush.msra.mxu1 %v688_v2  ;;  %v638_v6 = vsel %vm475_vm1, %v1721_v58, %v605_v3  ;;  %vm459_vm6 = vcmp.eq.s32.totalorder %v427_v1, 0  ;;  %vm491_vm7 = vcmp.eq.s32.totalorder %v427_v1, 1  ;;  %vm523_vm5 = vcmp.eq.s32.totalorder %v427_v1, 16 }
  0x9b   : > { %v671_v7 = vsel %vm443_vm2, %v1723_v59, %v638_v6  ;;  %vm555_vm8 = vcmp.eq.s32.totalorder %v427_v1, 17  ;;  %v410_v8 = vsub.s32 %v377_v4, %v1719_v57  ;;  %v426_v9 = vsub.s32 %v393_v5, %v1719_v57 }
  0x9c   : > { %715 = vmatpush.msra.mxu0 %v671_v7  ;;  %v588_v56 = vsel %vm555_vm8, %v1728_v61, 0.0  ;;  %v376_v12 = vadd.s32 24, %v1662_v19  ;;  %v392_v60 = vadd.s32 152, %v1662_v19  ;;  %v375_v63 = vadd.s32 16, %v1662_v19 }
  0x9d   : > { %v621_v13 = vsel %vm523_vm5, %v1730_v62, %v588_v56  ;;  %vm442_vm9 = vcmp.eq.s32.totalorder %v410_v8, 0  ;;  %vm474_vm10 = vcmp.eq.s32.totalorder %v410_v8, 1  ;;  %vm506_vm11 = vcmp.eq.s32.totalorder %v410_v8, 16  ;;  %v701_v7 = vld.sshfl [vmem:[#allocation1] sm:$0xff pattern:$0x75316420] }
  0x9e   : > { %v654_v14 = vsel %vm491_vm7, %v1721_v58, %v621_v13  ;;  %vm538_vm12 = vcmp.eq.s32.totalorder %v410_v8, 17  ;;  %vm458_vm13 = vcmp.eq.s32.totalorder %v426_v9, 0  ;;  %vm490_vm14 = vcmp.eq.s32.totalorder %v426_v9, 1 }
  0x9f   : > { %v687_v15 = vsel %vm459_vm6, %v1723_v59, %v654_v14  ;;  %v571_v16 = vsel %vm538_vm12, %v1728_v61, 0.0  ;;  %vm522_vm15 = vcmp.eq.s32.totalorder %v426_v9, 16  ;;  %vm554_vm0 = vcmp.eq.s32.totalorder %v426_v9, 17 }
  0xa0   : > { %735 = vmatpush.msra.mxu1 %v687_v15  ;;  %v604_v17 = vsel %vm506_vm11, %v1730_v62, %v571_v16  ;;  %v587_v18 = vsel %vm554_vm0, %v1728_v61, 0.0  ;;  %v409_v20 = vsub.s32 %v376_v12, %v1719_v57  ;;  %v425_v21 = vsub.s32 %v392_v60, %v1719_v57  ;;  %v702_v12 = vld.sshfl [vmem:[#allocation1 + $0x8] sm:$0xff pattern:$0x75316420] }
  0xa1   : > { %v637_v22 = vsel %vm474_vm10, %v1721_v58, %v604_v17  ;;  %v620_v23 = vsel %vm522_vm15, %v1730_v62, %v587_v18  ;;  %v408_v24 = vsub.s32 %v375_v63, %v1719_v57  ;;  %v391_v25 = vadd.s32 144, %v1662_v19 }
  0xa2   : > { %v670_v26 = vsel %vm442_vm9, %v1723_v59, %v637_v22  ;;  %v653_v0 = vsel %vm490_vm14, %v1721_v58, %v620_v23  ;;  %vm441_vm2 = vcmp.eq.s32.totalorder %v409_v20, 0  ;;  %vm473_vm1 = vcmp.eq.s32.totalorder %v409_v20, 1 }
  0xa3   : > { %716 = vmatpush.msra.mxu0 %v670_v26  ;;  %v686_v27 = vsel %vm458_vm13, %v1723_v59, %v653_v0  ;;  %vm505_vm3 = vcmp.eq.s32.totalorder %v409_v20, 16  ;;  %vm537_vm4 = vcmp.eq.s32.totalorder %v409_v20, 17  ;;  %vm457_vm6 = vcmp.eq.s32.totalorder %v425_v21, 0 }
  0xa4   : > { %736 = vmatpush.msra.mxu1 %v686_v27  ;;  %v570_v28 = vsel %vm537_vm4, %v1728_v61, 0.0  ;;  %vm489_vm7 = vcmp.eq.s32.totalorder %v425_v21, 1  ;;  %vm521_vm5 = vcmp.eq.s32.totalorder %v425_v21, 16  ;;  %vm553_vm8 = vcmp.eq.s32.totalorder %v425_v21, 17 }
  0xa5   : > { %v603_v29 = vsel %vm505_vm3, %v1730_v62, %v570_v28  ;;  %v586_v30 = vsel %vm553_vm8, %v1728_v61, 0.0  ;;  %vm440_vm9 = vcmp.eq.s32.totalorder %v408_v24, 0  ;;  %vm472_vm10 = vcmp.eq.s32.totalorder %v408_v24, 1 }
  0xa6   : > { %v636_v31 = vsel %vm473_vm1, %v1721_v58, %v603_v29  ;;  %v619_v32 = vsel %vm521_vm5, %v1730_v62, %v586_v30  ;;  %vm504_vm11 = vcmp.eq.s32.totalorder %v408_v24, 16  ;;  %vm536_vm12 = vcmp.eq.s32.totalorder %v408_v24, 17 }
  0xa7   : > { %v669_v33 = vsel %vm441_vm2, %v1723_v59, %v636_v31  ;;  %v652_v34 = vsel %vm489_vm7, %v1721_v58, %v619_v32  ;;  %v569_v35 = vsel %vm536_vm12, %v1728_v61, 0.0  ;;  %v424_v36 = vsub.s32 %v391_v25, %v1719_v57 }
  0xa8   : > { %717 = vmatpush.msra.mxu0 %v669_v33  ;;  %v685_v37 = vsel %vm457_vm6, %v1723_v59, %v652_v34  ;;  %v602_v38 = vsel %vm504_vm11, %v1730_v62, %v569_v35  ;;  %v374_v39 = vadd.s32 8, %v1662_v19  ;;  %v390_v40 = vadd.s32 136, %v1662_v19 }
  0xa9   : > { %737 = vmatpush.msra.mxu1 %v685_v37  ;;  %v635_v41 = vsel %vm472_vm10, %v1721_v58, %v602_v38  ;;  %vm488_vm13 = vcmp.eq.s32.totalorder %v424_v36, 1  ;;  %vm520_vm14 = vcmp.eq.s32.totalorder %v424_v36, 16  ;;  %vm552_vm15 = vcmp.eq.s32.totalorder %v424_v36, 17 }
  0xaa   : > { %v668_v42 = vsel %vm440_vm9, %v1723_v59, %v635_v41  ;;  %v407_v43 = vsub.s32 %v374_v39, %v1719_v57  ;;  %v423_v44 = vsub.s32 %v390_v40, %v1719_v57  ;;  %vm456_vm0 = vcmp.eq.s32.totalorder %v424_v36, 0 }
  0xab   : > { %718 = vmatpush.msra.mxu0 %v668_v42  ;;  %v585_v45 = vsel %vm552_vm15, %v1728_v61, 0.0  ;;  %v406_v46 = vsub.s32 %v1662_v19, %v1719_v57  ;;  %v389_v47 = vadd.s32 128, %v1662_v19 }
  0xac   : > { %v618_v48 = vsel %vm520_vm14, %v1730_v62, %v585_v45  ;;  %vm439_vm2 = vcmp.eq.s32.totalorder %v407_v43, 0  ;;  %vm471_vm1 = vcmp.eq.s32.totalorder %v407_v43, 1  ;;  %vm503_vm3 = vcmp.eq.s32.totalorder %v407_v43, 16 }
  0xad   : > { %v651_v49 = vsel %vm488_vm13, %v1721_v58, %v618_v48  ;;  %vm535_vm4 = vcmp.eq.s32.totalorder %v407_v43, 17  ;;  %vm455_vm6 = vcmp.eq.s32.totalorder %v423_v44, 0  ;;  %vm487_vm7 = vcmp.eq.s32.totalorder %v423_v44, 1 }
  0xae   : > { %v684_v50 = vsel %vm456_vm0, %v1723_v59, %v651_v49  ;;  %v568_v51 = vsel %vm535_vm4, %v1728_v61, 0.0  ;;  %vm519_vm5 = vcmp.eq.s32.totalorder %v423_v44, 16  ;;  %vm551_vm8 = vcmp.eq.s32.totalorder %v423_v44, 17 }
  0xaf   : > { %738 = vmatpush.msra.mxu1 %v684_v50  ;;  %v601_v52 = vsel %vm503_vm3, %v1730_v62, %v568_v51  ;;  %v584_v19 = vsel %vm551_vm8, %v1728_v61, 0.0  ;;  %vm438_vm9 = vcmp.eq.s32.totalorder %v406_v46, 0  ;;  %vm470_vm10 = vcmp.eq.s32.totalorder %v406_v46, 1 }
  0xb0   : > { %v634_v53 = vsel %vm471_vm1, %v1721_v58, %v601_v52  ;;  %v617_v54 = vsel %vm519_vm5, %v1730_v62, %v584_v19  ;;  %vm502_vm11 = vcmp.eq.s32.totalorder %v406_v46, 16  ;;  %vm534_vm12 = vcmp.eq.s32.totalorder %v406_v46, 17 }
  0xb1   : > { %v667_v55 = vsel %vm439_vm2, %v1723_v59, %v634_v53  ;;  %v650_v1 = vsel %vm487_vm7, %v1721_v58, %v617_v54  ;;  %v567_v2 = vsel %vm534_vm12, %v1728_v61, 0.0  ;;  %v422_v3 = vsub.s32 %v389_v47, %v1719_v57 }
  0xb2   : > { %719 = vmatpush.msra.mxu0 %v667_v55  ;;  %v683_v4 = vsel %vm455_vm6, %v1723_v59, %v650_v1  ;;  %v600_v5 = vsel %vm502_vm11, %v1730_v62, %v567_v2 }
  0xb3   : > { %739 = vmatpush.msra.mxu1 %v683_v4  ;;  %v633_v6 = vsel %vm470_vm10, %v1721_v58, %v600_v5  ;;  %vm518_vm13 = vcmp.eq.s32.totalorder %v422_v3, 16  ;;  %vm486_vm14 = vcmp.eq.s32.totalorder %v422_v3, 1  ;;  %vm550_vm15 = vcmp.eq.s32.totalorder %v422_v3, 17 }
  0xb4   : > { %v666_v8 = vsel %vm438_vm9, %v1723_v59, %v633_v6  ;;  %vm454_vm0 = vcmp.eq.s32.totalorder %v422_v3, 0  ;;  %v583_v57 = vsel %vm550_vm15, %v1728_v61, 0.0  ;;  %v745_v61 = vand.u32 2147483647, %v1656_v10 }
  0xb5   : > { %720 = vmatpush.msra.mxu0 %v666_v8  ;;  %v616_v9 = vsel %vm518_vm13, %v1730_v62, %v583_v57  ;;  %v747_v62 = vand.u32 2147483647, %v1658_v11 }
  0xb6   : > { %721 = vmatmul.f32.vlgmr.msra.gmra.mxu0 %v701_v7  ;;  %v649_v56 = vsel %vm486_vm14, %v1721_v58, %v616_v9  ;;  %vm746_vm2 = vcmp.lt.f32.partialorder %v745_v61, 1.0  ;;  %v1403_v58 = vmov 0.0  }
  0xb7   : > { %v682_v60 = vsel %vm454_vm0, %v1723_v59, %v649_v56  ;;  %vm748_vm1 = vcmp.lt.f32.partialorder %v747_v62, 1.0 }
  0xb8   : > { %740 = vmatpush.msra.mxu1 %v682_v60  ;;  %vm749_vm3 = vmand %vm746_vm2, %vm748_vm1 }
  0xb9   : > { %741 = vmatmul.f32.vlgmr.msra.gmra.mxu1 %v702_v12  ;;  %v970_v59 = vsel %vm749_vm3, 1.0, %v1403_v58 }
  0xba   : > { %755 = vst [vmem:[%s320_s13] sm:$0x1] %v970_v59 }
  0xbb   : > { %1242 = shalt.err (!%p1239_p13)
}
  0xbc   : > { %990 = dma.vmem_to_hbm [thread:$0]  (%p1614_p11), %s791_s21, 16, %s793_s11, %s762_s24   ;;  %v752_v11 = vperm.slane %v970_v59, 0 }
  0xbd   : > { %s967_s4 = sshll.u32 %s1649_s30, 2  ;;  %s973_s29 = sshll.u32 %s1980_s7, 2 }
  0xbe   : > { %s2114_s18 = sld [smem:[#allocation25_spill]]  ;;  %s314_s25 = scalar_lea.vmem [#allocation8], %s967_s4 }
  0xbf   : > { %s775_s0 = sshll.u32 %s314_s25, 4  ;;  %s757_s9 = scalar_lea.sflag [#allocation4], %s1649_s30  ;;  %s776_s0 = int_to_ptr.vmem [resolvable:$true] %s775_s0 }
  0xc4   : > { %s2115_s8 = smov %s2114_s18  ;;  %s773_s13 = scalar_lea.hbm %s2114_s18, %s973_s29 }
  0xc5   : > { %s777_s5 = sshll.u32 %s773_s13, 4  ;;  %s1263_s10 = scalar_lea.hbm %s2115_s8, 16  ;;  %s778_s5 = int_to_ptr.hbm [resolvable:$true] %s777_s5 }
  0xc6   : > { %s1257_s21 = sshra.s32 %s778_s5, 4  ;;  %s1258_s21 = int_to_ptr.hbm [resolvable:$true] %s1257_s21 }
  0xc7   : > { %s1259_s7 = scalar_lea.hbm %s1258_s21, 4  ;;  %p1264_p8 = scmp.lt.s32.totalorder %s1258_s21, %s2115_s8 }
  0xc8   : > { %p1260_p3 = scmp.ne.s32.totalorder %s1258_s21, %s1259_s7  ;;  %p1265_p1 = scmp.lt.s32.totalorder %s1263_s10, %s1259_s7 }
  0xca   : > { %p1261_p4 = pnand %p1260_p3, %p1614_p11  ;;  %p1266_p5 = por %p1265_p1, %p1264_p8 }
  0xcc   : > { %p1262_p2 = pneg %p1261_p4 }
  0xce   : > { %p1267_p6 = pnand %p1266_p5, %p1262_p2 }
 0x133   : > { %v722_v10 = vpop.f32.mrf.mxu0 }
 0x136   : > { %v742_v63 = vpop.f32.mrf.mxu1 }
 0x137   : > { %v743_v13 = vadd.f32 %v742_v63, %v722_v10 }
 0x139   : > { %v753_v14 = vmul.f32 %v752_v11, %v743_v13 }
 0x13b   : > { %754 = vst [vmem:[%s314_s25] sm:$0xf] %v753_v14 }
 0x13c   : > { %1270 = shalt.err (!%p1267_p6)
}
 0x13d   : > { %989 = dma.vmem_to_hbm [thread:$0]  (%p1614_p11), %s776_s0, 64, %s778_s5, %s757_s9  }
 0x13e PF: > { %p1011_p10 = scmp.ge.s32.totalorder %s1401_s28, 2  ;;  %s804_s30 = sand.u32 1, %s1349_s15  }
 0x13f   : > { %s805_s4 = scalar_lea.sflag [#allocation4], %s804_s30 }
 0x140   : > { %p1004_p7 = pnand %p1011_p10, %p1618_p0 }
 0x142   : > { %p1005_p9 = pneg %p1004_p7 }
 0x144   : > { %1340 = dma.done.wait (%p1005_p9), %s805_s4, 64  }
 0x145   : > { %1342 = vsyncadd (%p1005_p9), %s805_s4, 4294967232  ;;  %s815_s29 = scalar_lea.sflag [#allocation10], %s804_s30 }
 0x146   : > { %1344 = dma.done.wait (%p1005_p9), %s815_s29, 16  }
 0x147   : > { %1346 = vsyncadd (%p1005_p9), %s815_s29, 4294967280  ;;  %s27_s28 = sadd.s32 1, %s1401_s28   ;;  %s2117_s23 = sld [smem:[#allocation22_spill]] }
 0x148   : > { %p2021_p12 = scmp.ge.s32.totalorder %s27_s28, 6   ;;  %s2118_s14 = sld [smem:[#allocation16_spill]] }
 0x149   : > { %s2119_s20 = sld [smem:[#allocation21_spill]]  ;;  %s2124_s15 = smov %s1353_s16 }
 0x14a   : > { %s2120_s13 = sld [smem:[#allocation17_spill]]  ;;  %s2125_s16 = smov %s1357_s17 }
 0x14b   : > { %s2121_s25 = sld [smem:[#allocation20_spill]]  ;;  %s2127_s18 = smov %s1365_s19 }
 0x14c   : > { %s2122_s0 = sld [smem:[#allocation18_spill]]  ;;  %s2129_s21 = smov %s1377_s22 }
 0x14d   : > { %s2123_s5 = sld [smem:[#allocation19_spill]]  ;;  %s2126_s17 = smov %s2117_s23 }
 0x14e   : > { %s2128_s19 = smov %s2118_s14  ;;  %s2132_s24 = smov %s1393_s26 }
 0x14f   :  { %26 = sbr.rel (!%p2021_p12) target bundleno = 19 (0x13), region = 118 }
 0x150   : > { %s2130_s22 = smov %s2120_s13 }
 0x151   : > { %s2131_s23 = smov %s2121_s25  ;;  %s2133_s25 = smov %s1397_s27 }
 0x152   : > { %s2134_s26 = smov %s2122_s0 }
 0x153   : > { %s2135_s27 = smov %s2123_s5 }
 0x154   :  { %820 = vsyncpa [#allocation3], 1 }
 0x155   :  { %822 = vsyncpa [#allocation3 + $0x1], 1 }
 0x156   :  { %823 = vsyncpa [#allocation6], 1 }
 0x157   :  { %825 = vsyncpa [#allocation6 + $0x1], 1 }
 0x158   :  { %826 = vsyncpa [#allocation4], 1 }
 0x159   :  { %828 = vsyncpa [#allocation4 + $0x1], 1 }
 0x15a   :  { %829 = vsyncpa [#allocation10], 1 }
 0x15b   :  { %831 = vsyncpa [#allocation10 + $0x1], 1 }

</bundles_post_ra>
